<compile_context>
chip_gen: v7x
topology: tpu7x:2x2x1
jax: 0.10.0
libtpu: 0.0.40
codegen_flags: <defaults>
</compile_context>

<pallas_src>
import functools

import jax
import jax.numpy as jnp
from jax.experimental import pallas as pl
from jax.experimental.pallas import tpu as pltpu


def _round_up(a, b):
    return ((a + b - 1) // b) * b


def _triplet_hard_kernel(cand_ref, anchT_ref, csqh_ref, clab_ref, alab_ref,
                         hp_ref, hn_ref):
    """One (anchor_block i, candidate_block j) tile of batch-hard mining.

    Tile layout is transposed: sublanes = candidate samples (reduced over,
    grid axis j), lanes = anchor samples (outputs, grid axis i).  hp_ref /
    hn_ref are lane-dense (1, t) running max / min of the distance proxy,
    resident across the j (reduction) grid axis.
    """
    j = pl.program_id(1)

    @pl.when(j == 0)
    def _init():
        hp_ref[...] = jnp.full(hp_ref.shape, -jnp.inf, dtype=hp_ref.dtype)
        hn_ref[...] = jnp.full(hn_ref.shape, jnp.inf, dtype=hn_ref.dtype)

    # Gram block on the MXU, plain MN-form (t, D) @ (D, t): anchor operand is
    # pre-transposed in the wrapper, so no per-tile RHS relayout is needed.
    gram = jnp.dot(cand_ref[...], anchT_ref[...],
                   preferred_element_type=jnp.float32)        # (t_c, t_a) f32

    # Distance proxy: m[c, a] = 0.5*||e_c||^2 - <e_c, e_a>
    #   dist2[a, c] = ||e_a||^2 + 2*m[c, a]  (recovered in the wrapper epilogue;
    #   ||e_a||^2 is constant per anchor so argmax/argmin are unchanged).
    m = csqh_ref[...] - gram                                   # (t_c,1)-(t_c,t_a)

    sim = clab_ref[...] == alab_ref[...]                       # (t_c, t_a) bool
    # Padded candidates never match (label -1) and have a poisoned (huge) norm,
    # so no explicit validity mask is needed.

    hp_blk = jnp.max(jnp.where(sim, m, -jnp.inf), axis=0, keepdims=True)  # (1,t_a)
    hn_blk = jnp.min(jnp.where(sim, jnp.inf, m), axis=0, keepdims=True)   # (1,t_a)

    hp_ref[...] = jnp.maximum(hp_ref[...], hp_blk)
    hn_ref[...] = jnp.minimum(hn_ref[...], hn_blk)


def _pick_tile(n_pad, d, itemsize, vmem_budget_bytes):
    """Largest tile from {512,384,256,128} dividing n_pad that fits the VMEM
    budget, preferring >= 2 anchor blocks so the 'parallel' axis can shard
    across v7x's two TensorCores."""
    def est_bytes(t):
        # double-buffered (t,d)+(d,t) emb tiles + a few (t,t) f32 temporaries
        return 4 * t * d * itemsize + 3 * t * t * 4 + 16 * t * 4

    cands = [t for t in (512, 384, 256, 128)
             if n_pad % t == 0 and est_bytes(t) <= vmem_budget_bytes]
    if not cands:
        return 128
    multi_row = [t for t in cands if n_pad // t >= 2]
    return max(multi_row) if multi_row else max(cands)


@functools.partial(jax.jit, static_argnames=("margin", "use_bf16_gram"))
def triplet_loss(emb, label, margin=0.3, use_bf16_gram=False):
    """emb: (N, D) float, label: (N,) int (labels >= 0) -> (loss, prec).

    Matches TripletLoss.forward(emb, label) with mid_hard=False, emb_=None.
    """
    n, d = emb.shape
    n_pad = _round_up(max(n, 1), 128)

    # VMEM-aware limits (v5e/v6e: 128 MiB per core, v7x: 64 MiB per core).
    try:
        vmem_cap = int(pltpu.get_tpu_info().vmem_capacity_bytes)
    except Exception:
        vmem_cap = 64 * 1024 * 1024  # conservative fallback (v7x per-TC size)
    vmem_limit = int(min((vmem_cap * 3) // 4, 96 * 1024 * 1024))

    emb_dtype = jnp.bfloat16 if use_bf16_gram else jnp.float32
    itemsize = 2 if use_bf16_gram else 4
    t = _pick_tile(n_pad, d, itemsize, int(vmem_limit * 0.8))
    grid = (n_pad // t, n_pad // t)

    # Pad embeddings / labels; poison padded columns' squared norm with a large
    # FINITE value so they can never win the hard-negative min.
    emb_f32 = jnp.zeros((n_pad, d), jnp.float32).at[:n].set(emb.astype(jnp.float32))
    sq = jnp.sum(emb_f32 * emb_f32, axis=1)                        # (n_pad,)
    sq_poisoned = jnp.where(jnp.arange(n_pad) < n, sq, 1e30)
    csq_half = (0.5 * sq_poisoned).reshape(n_pad, 1)               # candidate 0.5*||e||^2

    lab = jnp.full((n_pad,), -1, jnp.int32).at[:n].set(label.astype(jnp.int32))
    clab = lab.reshape(n_pad, 1)                                    # candidate labels
    alab = lab.reshape(1, n_pad)                                    # anchor labels (lane-dense)

    emb_in = emb_f32.astype(emb_dtype)                              # candidate tiles (rows)
    emb_t = emb_in.T                                                # anchors, pre-transposed (D, n_pad)

    # TODO(synk): the anchor tile block index is constant across j; once
    # pl.Buffered(1) is validated on this toolchain, set it on that BlockSpec
    # to drop its redundant second buffer (VMEM only, no perf change).
    hp, hn = pl.pallas_call(
        _triplet_hard_kernel,
        out_shape=(
            jax.ShapeDtypeStruct((1, n_pad), jnp.float32),
            jax.ShapeDtypeStruct((1, n_pad), jnp.float32),
        ),
        grid_spec=pltpu.PrefetchScalarGridSpec(
            num_scalar_prefetch=0,
            grid=grid,
            in_specs=[
                pl.BlockSpec((t, d), lambda i, j: (j, 0)),   # candidate emb tile
                pl.BlockSpec((d, t), lambda i, j: (0, i)),   # anchor emb tile (pre-T)
                pl.BlockSpec((t, 1), lambda i, j: (j, 0)),   # 0.5*||cand||^2 (poisoned pad)
                pl.BlockSpec((t, 1), lambda i, j: (j, 0)),   # candidate labels
                pl.BlockSpec((1, t), lambda i, j: (0, i)),   # anchor labels (lane-dense)
            ],
            out_specs=(
                pl.BlockSpec((1, t), lambda i, j: (0, i)),   # hard_p proxy (resident over j)
                pl.BlockSpec((1, t), lambda i, j: (0, i)),   # hard_n proxy (resident over j)
            ),
        ),
        compiler_params=pltpu.CompilerParams(
            dimension_semantics=("parallel", "arbitrary"),
            vmem_limit_bytes=vmem_limit,
        ),
    )(emb_in, emb_t, csq_half, clab, alab)

    # O(N) epilogue: recover distances (clamp + sqrt are monotone, so applying
    # them after the reduction is exact), then margin-ranking loss + precision.
    sq_n = sq[:n]
    hard_p = jnp.sqrt(jnp.maximum(sq_n + 2.0 * hp[0, :n], 1e-12))
    hard_n = jnp.sqrt(jnp.maximum(sq_n + 2.0 * hn[0, :n], 1e-12))

    loss = jnp.mean(jnp.maximum(hard_p - hard_n + margin, 0.0))
    prec = jnp.mean((hard_n > hard_p).astype(jnp.float32))
    # TODO(synk): mid_hard=True (second-hardest positive, needs a top-2 reduce)
    # and the emb_ != None cross-set branch of the PyTorch module are not
    # implemented here.
    return loss, prec


def _reference(emb, label, margin=0.3):
    """Pure-JAX reference mirroring the PyTorch module (emb_=None, mid_hard=False)."""
    x = emb.astype(jnp.float32)
    sq = jnp.sum(x * x, axis=1, keepdims=True)
    dist = jnp.sqrt(jnp.maximum(sq + sq.T - 2.0 * (x @ x.T), 1e-12))
    sim = (label[:, None] == label[None, :]).astype(jnp.float32)
    hard_p = jnp.max(dist - 9999999.0 * (1.0 - sim), axis=1)
    hard_n = jnp.min(dist + 9999999.0 * sim, axis=1)
    loss = jnp.mean(jnp.maximum(hard_p - hard_n + margin, 0.0))
    prec = jnp.mean((hard_n > hard_p).astype(jnp.float32))
    return loss, prec


if __name__ == "__main__":
    key = jax.random.PRNGKey(0)
    k_emb, _ = jax.random.split(key)

    N, D = 8, 32          # 8 samples, 32-dim embeddings, 4 identities x 2 samples
    margin = 0.3

    emb = jax.random.normal(k_emb, (N, D), dtype=jnp.float32)
    label = jnp.array([0, 0, 1, 1, 2, 2, 3, 3], dtype=jnp.int32)

    loss, prec = triplet_loss(emb, label, margin=margin)
    loss = jax.block_until_ready(loss)
    prec = jax.block_until_ready(prec)

    ref_loss, ref_prec = _reference(emb, label, margin=margin)
    assert jnp.allclose(loss, ref_loss, atol=1e-4), (loss, ref_loss)
    assert jnp.allclose(prec, ref_prec, atol=1e-6), (prec, ref_prec)

    print("KERNEL_OK")
</pallas_src>

<mosaic_0001>
module attributes {stable_mosaic.version = 11 : i64} {
  func.func @_triplet_hard_kernel(%arg0: i32, %arg1: i32, %arg2: memref<128x32xf32, #tpu.memory_space<vmem>>, %arg3: memref<32x128xf32, #tpu.memory_space<vmem>>, %arg4: memref<128x1xf32, #tpu.memory_space<vmem>>, %arg5: memref<128x1xi32, #tpu.memory_space<vmem>>, %arg6: memref<1x128xi32, #tpu.memory_space<vmem>>, %arg7: memref<1x128xf32, #tpu.memory_space<vmem>>, %arg8: memref<1x128xf32, #tpu.memory_space<vmem>>) attributes {dimension_semantics = [#tpu.dimension_semantics<parallel>, #tpu.dimension_semantics<arbitrary>], iteration_bounds = array<i64: 1, 1>, scalar_prefetch = 0 : i64, scratch_operands = 0 : i64, tpu.core_type = #tpu.core_type<tc>, window_params = [{transform_indices = @transform_0, window_bounds = array<i64: 128, 32>}, {transform_indices = @transform_1, window_bounds = array<i64: 32, 128>}, {transform_indices = @transform_2, window_bounds = array<i64: 128, 1>}, {transform_indices = @transform_3, window_bounds = array<i64: 128, 1>}, {transform_indices = @transform_4, window_bounds = array<i64: 1, 128>}, {transform_indices = @transform_5, window_bounds = array<i64: 1, 128>}, {transform_indices = @transform_6, window_bounds = array<i64: 1, 128>}]} {
    %c0_i32 = arith.constant 0 : i32
    %0 = arith.cmpi eq, %arg1, %c0_i32 : i32
    %1 = arith.extui %0 : i1 to i32
    %c0_i32_0 = arith.constant 0 : i32
    %2 = arith.cmpi ne, %1, %c0_i32_0 : i32
    scf.if %2 {
      %cst_22 = arith.constant 0xFF800000 : f32
      %28 = vector.broadcast %cst_22 : f32 to vector<1x128xf32>
      %c0_23 = arith.constant 0 : index
      %c0_24 = arith.constant 0 : index
      %29 = vector.load %arg7[%c0_23, %c0_24] : memref<1x128xf32, #tpu.memory_space<vmem>>, vector<1x128xf32>
      tpu.vector_store %arg7[%c0_23, %c0_24], %28 {strides = array<i32>} : memref<1x128xf32, #tpu.memory_space<vmem>>, vector<1x128xf32>,
      %cst_25 = arith.constant 0x7F800000 : f32
      %30 = vector.broadcast %cst_25 : f32 to vector<1x128xf32>
      %c0_26 = arith.constant 0 : index
      %c0_27 = arith.constant 0 : index
      %31 = vector.load %arg8[%c0_26, %c0_27] : memref<1x128xf32, #tpu.memory_space<vmem>>, vector<1x128xf32>
      tpu.vector_store %arg8[%c0_26, %c0_27], %30 {strides = array<i32>} : memref<1x128xf32, #tpu.memory_space<vmem>>, vector<1x128xf32>,
    } else {
    }
    %c0 = arith.constant 0 : index
    %c0_1 = arith.constant 0 : index
    %3 = vector.load %arg2[%c0, %c0_1] : memref<128x32xf32, #tpu.memory_space<vmem>>, vector<128x32xf32>
    %c0_2 = arith.constant 0 : index
    %c0_3 = arith.constant 0 : index
    %4 = vector.load %arg3[%c0_2, %c0_3] : memref<32x128xf32, #tpu.memory_space<vmem>>, vector<32x128xf32>
    %cst = arith.constant dense<0.000000e+00> : vector<128x128xf32>
    %5 = tpu.matmul %3, %4, %cst {dimension_numbers = #tpu.dot_dimension_numbers<[1], [0], [0], [1], [0, 0, 1, 1], [], []>} : vector<128x32xf32>, vector<32x128xf32>, vector<128x128xf32> -> vector<128x128xf32>
    %c0_4 = arith.constant 0 : index
    %c0_5 = arith.constant 0 : index
    %6 = vector.load %arg4[%c0_4, %c0_5] : memref<128x1xf32, #tpu.memory_space<vmem>>, vector<128x1xf32>
    %7 = vector.broadcast %6 : vector<128x1xf32> to vector<128x128xf32>
    %8 = arith.subf %7, %5 : vector<128x128xf32>
    %c0_6 = arith.constant 0 : index
    %c0_7 = arith.constant 0 : index
    %9 = vector.load %arg5[%c0_6, %c0_7] : memref<128x1xi32, #tpu.memory_space<vmem>>, vector<128x1xi32>
    %c0_8 = arith.constant 0 : index
    %c0_9 = arith.constant 0 : index
    %10 = vector.load %arg6[%c0_8, %c0_9] : memref<1x128xi32, #tpu.memory_space<vmem>>, vector<1x128xi32>
    %11 = vector.broadcast %9 : vector<128x1xi32> to vector<128x128xi32>
    %12 = vector.broadcast %10 : vector<1x128xi32> to vector<128x128xi32>
    %13 = arith.cmpi eq, %11, %12 : vector<128x128xi32>
    %cst_10 = arith.constant 0xFF800000 : f32
    %14 = vector.broadcast %cst_10 : f32 to vector<128x128xf32>
    %15 = arith.select %13, %8, %14 : vector<128x128xi1>, vector<128x128xf32>
    %cst_11 = arith.constant dense<0xFF800000> : vector<128xf32>
    %16 = vector.multi_reduction <maximumf>, %15, %cst_11 [0] : vector<128x128xf32> to vector<128xf32>
    %17 = vector.shape_cast %16 : vector<128xf32> to vector<1x128xf32>
    %cst_12 = arith.constant 0x7F800000 : f32
    %18 = vector.broadcast %cst_12 : f32 to vector<128x128xf32>
    %19 = arith.select %13, %18, %8 : vector<128x128xi1>, vector<128x128xf32>
    %cst_13 = arith.constant dense<0x7F800000> : vector<128xf32>
    %20 = vector.multi_reduction <minimumf>, %19, %cst_13 [0] : vector<128x128xf32> to vector<128xf32>
    %21 = vector.shape_cast %20 : vector<128xf32> to vector<1x128xf32>
    %c0_14 = arith.constant 0 : index
    %c0_15 = arith.constant 0 : index
    %22 = vector.load %arg7[%c0_14, %c0_15] : memref<1x128xf32, #tpu.memory_space<vmem>>, vector<1x128xf32>
    %23 = arith.maximumf %22, %17 : vector<1x128xf32>
    %c0_16 = arith.constant 0 : index
    %c0_17 = arith.constant 0 : index
    %24 = vector.load %arg7[%c0_16, %c0_17] : memref<1x128xf32, #tpu.memory_space<vmem>>, vector<1x128xf32>
    tpu.vector_store %arg7[%c0_16, %c0_17], %23 {strides = array<i32>} : memref<1x128xf32, #tpu.memory_space<vmem>>, vector<1x128xf32>,
    %c0_18 = arith.constant 0 : index
    %c0_19 = arith.constant 0 : index
    %25 = vector.load %arg8[%c0_18, %c0_19] : memref<1x128xf32, #tpu.memory_space<vmem>>, vector<1x128xf32>
    %26 = arith.minimumf %25, %21 : vector<1x128xf32>
    %c0_20 = arith.constant 0 : index
    %c0_21 = arith.constant 0 : index
    %27 = vector.load %arg8[%c0_20, %c0_21] : memref<1x128xf32, #tpu.memory_space<vmem>>, vector<1x128xf32>
    tpu.vector_store %arg8[%c0_20, %c0_21], %26 {strides = array<i32>} : memref<1x128xf32, #tpu.memory_space<vmem>>, vector<1x128xf32>,
    return
  }
  func.func @transform_0(%arg0: i32, %arg1: i32) -> (i32, i32) {
    %c0_i32 = arith.constant 0 : i32
    %c0_i32_0 = arith.constant 0 : i32
    return %arg1, %c0_i32 : i32, i32
  }
  func.func @transform_1(%arg0: i32, %arg1: i32) -> (i32, i32) {
    %c0_i32 = arith.constant 0 : i32
    %c0_i32_0 = arith.constant 0 : i32
    return %c0_i32, %arg0 : i32, i32
  }
  func.func @transform_2(%arg0: i32, %arg1: i32) -> (i32, i32) {
    %c0_i32 = arith.constant 0 : i32
    %c0_i32_0 = arith.constant 0 : i32
    return %arg1, %c0_i32 : i32, i32
  }
  func.func @transform_3(%arg0: i32, %arg1: i32) -> (i32, i32) {
    %c0_i32 = arith.constant 0 : i32
    %c0_i32_0 = arith.constant 0 : i32
    return %arg1, %c0_i32 : i32, i32
  }
  func.func @transform_4(%arg0: i32, %arg1: i32) -> (i32, i32) {
    %c0_i32 = arith.constant 0 : i32
    %c0_i32_0 = arith.constant 0 : i32
    return %c0_i32, %arg0 : i32, i32
  }
  func.func @transform_5(%arg0: i32, %arg1: i32) -> (i32, i32) {
    %c0_i32 = arith.constant 0 : i32
    %c0_i32_0 = arith.constant 0 : i32
    return %c0_i32, %arg0 : i32, i32
  }
  func.func @transform_6(%arg0: i32, %arg1: i32) -> (i32, i32) {
    %c0_i32 = arith.constant 0 : i32
    %c0_i32_0 = arith.constant 0 : i32
    return %c0_i32, %arg0 : i32, i32
  }
}

</mosaic_0001>

<bundles_post_ra>
// kernel: triplet_loss.1
= control target key start
LH: loop header
LB: loop body
LE: loop exit
PB: predicated region body
PF: predicated region fallthrough
CT: control target
= control target key end

     0   :  { %v613_v0 = vmov 0   ;;  %vm48_vm0 = vcmask 261120   ;;  %v614_v55 = vmov -inf   ;;  %v615_v56 = vmov inf   ;;  %s988_s2 = inlined_call_operand.vmem [shape: f32[128,1], index: 2, kind: input, shape index: {}]   ;;  %s989_s1 = inlined_call_operand.vmem [shape: f32[32,128], index: 1, kind: input, shape index: {}]   ;;  %s990_s0 = inlined_call_operand.vmem [shape: f32[128,32], index: 0, kind: input, shape index: {}]   ;;  %s991_s3 = inlined_call_operand.vmem [shape: s32[128,1], index: 3, kind: input, shape index: {}]   ;;  %s992_s5 = inlined_call_operand.vmem [shape: f32[1,128], index: 5, kind: output, shape index: {0}]   ;;  %s993_s6 = inlined_call_operand.vmem [shape: f32[1,128], index: 6, kind: output, shape index: {1}]   ;;  %s994_s4 = inlined_call_operand.vmem [shape: s32[1,128], index: 4, kind: input, shape index: {}]  }
   0x1   :  { %612 = vset.pattern.permute.xlu1 %v613_v0  ;;  %611 = vset.pattern.permute.xlu0 %v613_v0  ;;  %v244_v1 = vld [vmem:[%s988_s2 + $0x10] sm:$0xff]  ;;  %v242_v2 = vld [vmem:[%s988_s2] sm:$0xff]  ;;  %v45_v4 = vld [vmem:[%s989_s1 + $0x8] sm:$0xff]  ;;  %26 = vst [vmem:[%s992_s5] sm:$0x1] %v614_v55 }
   0x2   :  { %v44_v3 = vld [vmem:[%s989_s1] sm:$0xff]  ;;  %270 = vperm.xlu1 %612, %v244_v1   ;;  %260 = vperm.xlu0 %611, %v242_v2   ;;  %v46_v6 = vld [vmem:[%s989_s1 + $0x10] sm:$0xff]  ;;  %v47_v7 = vld [vmem:[%s989_s1 + $0x18] sm:$0xff]  ;;  %27 = vst [vmem:[%s993_s6] sm:$0x1] %v615_v56 }
   0x3   :  { %v596_v5 = vpack.c.bf16 %v45_v4, %v44_v3  ;;  %v245_v8 = vld [vmem:[%s988_s2 + $0x18] sm:$0xff]  ;;  %v243_v9 = vld [vmem:[%s988_s2 + $0x8] sm:$0xff]  ;;  %v600_v10 = vpack.c.bf16 %v47_v7, %v46_v6  ;;  %v28_v11 = vld [vmem:[%s990_s0] sm:$0xff] }
   0x4   :  { %v36_v12 = vld [vmem:[%s990_s0 + $0x40] sm:$0xff]  ;;  %v247_v13 = vld [vmem:[%s988_s2 + $0x28] sm:$0xff]  ;;  %572 = vmatprep.mubr.msk.f32.mxu0 %vm48_vm0, %v28_v11  ;;  %v30_v17 = vld [vmem:[%s990_s0 + $0x10] sm:$0xff] }
   0x5   :  { %597 = vmatprep.subr.bf16.mxu0 %v596_v5  ;;  %604 = vmatprep.subr.bf16.mxu1 %v596_v5  ;;  %v246_v14 = vld [vmem:[%s988_s2 + $0x20] sm:$0xff]  ;;  %v29_v15 = vld [vmem:[%s990_s0 + $0x8] sm:$0xff]  ;;  %v38_v18 = vld [vmem:[%s990_s0 + $0x50] sm:$0xff] }
   0x6   :  { %599 = vmatpush3.bf16.msra.mxu0 %v596_v5  ;;  %606 = vmatpush3.bf16.msra.mxu1 %v596_v5  ;;  %v37_v16 = vld [vmem:[%s990_s0 + $0x48] sm:$0xff]  ;;  %v249_v19 = vld [vmem:[%s988_s2 + $0x38] sm:$0xff]  ;;  %v248_v20 = vld [vmem:[%s988_s2 + $0x30] sm:$0xff] }
   0x7   :  { %275 = vperm.xlu1 %612, %v245_v8   ;;  %265 = vperm.xlu0 %611, %v243_v9   ;;  %v31_v21 = vld [vmem:[%s990_s0 + $0x18] sm:$0xff]  ;;  %v32_v23 = vld [vmem:[%s990_s0 + $0x20] sm:$0xff]  ;;  %v251_v25 = vld [vmem:[%s988_s2 + $0x48] sm:$0xff] }
   0x8   :  { %601 = vmatprep.subr.bf16.mxu0 %v600_v10  ;;  %605 = vmatprep.subr.bf16.mxu1 %v600_v10  ;;  %v39_v22 = vld [vmem:[%s990_s0 + $0x58] sm:$0xff]  ;;  %v40_v24 = vld [vmem:[%s990_s0 + $0x60] sm:$0xff]  ;;  %v33_v27 = vld [vmem:[%s990_s0 + $0x28] sm:$0xff] }
   0x9   :  { %584 = vmatprep.mubr.msk.f32.mxu1 %vm48_vm0, %v36_v12  ;;  %v250_v26 = vld [vmem:[%s988_s2 + $0x40] sm:$0xff]  ;;  %v41_v28 = vld [vmem:[%s990_s0 + $0x68] sm:$0xff]  ;;  %v34_v29 = vld [vmem:[%s990_s0 + $0x30] sm:$0xff] }
   0xa   :  { %603 = vmatpush3.bf16.msra.mxu0 %v600_v10  ;;  %607 = vmatpush3.bf16.msra.mxu1 %v600_v10  ;;  %v42_v30 = vld [vmem:[%s990_s0 + $0x70] sm:$0xff]  ;;  %v355_v31 = vld [vmem:[%s991_s3 + $0x8] sm:$0xff]  ;;  %v354_v32 = vld [vmem:[%s991_s3] sm:$0xff] }
   0xb   :  { %285 = vperm.xlu1 %612, %v247_v13   ;;  %280 = vperm.xlu0 %611, %v246_v14   ;;  %v35_v33 = vld [vmem:[%s990_s0 + $0x38] sm:$0xff]  ;;  %v356_v36 = vld [vmem:[%s991_s3 + $0x10] sm:$0xff]  ;;  %v359_v37 = vld [vmem:[%s991_s3 + $0x28] sm:$0xff] }
   0xc   :  { %v43_v34 = vld [vmem:[%s990_s0 + $0x78] sm:$0xff]  ;;  %v358_v38 = vld [vmem:[%s991_s3 + $0x20] sm:$0xff]  ;;  %v360_v40 = vld [vmem:[%s991_s3 + $0x30] sm:$0xff] }
   0xd   :  { %573 = vmatmul.mubr.msk.f32.vlgmr.msra.gmra.mrb[0].mxu0 %vm48_vm0, %v29_v15  ;;  %585 = vmatmul.mubr.msk.f32.vlgmr.msra.gmra.mrb[0].mxu1 %vm48_vm0, %v37_v16  ;;  %v357_v35 = vld [vmem:[%s991_s3 + $0x18] sm:$0xff]  ;;  %v252_v42 = vld [vmem:[%s988_s2 + $0x50] sm:$0xff]  ;;  %v363_v43 = vld [vmem:[%s991_s3 + $0x48] sm:$0xff] }
   0xe   :  { %575 = vmatprep.mubr.msk.f32.mxu0 %vm48_vm0, %v30_v17  ;;  %587 = vmatprep.mubr.msk.f32.mxu1 %vm48_vm0, %v38_v18  ;;  %v361_v39 = vld [vmem:[%s991_s3 + $0x38] sm:$0xff]  ;;  %v362_v44 = vld [vmem:[%s991_s3 + $0x40] sm:$0xff]  ;;  %v364_v46 = vld [vmem:[%s991_s3 + $0x50] sm:$0xff] }
   0xf   :  { %295 = vperm.xlu1 %612, %v249_v19   ;;  %290 = vperm.xlu0 %611, %v248_v20   ;;  %v253_v41 = vld [vmem:[%s988_s2 + $0x58] sm:$0xff]  ;;  %v255_v47 = vld [vmem:[%s988_s2 + $0x68] sm:$0xff]  ;;  %v254_v48 = vld [vmem:[%s988_s2 + $0x60] sm:$0xff] }
  0x10   :  { %v365_v45 = vld [vmem:[%s991_s3 + $0x58] sm:$0xff]  ;;  %v256_v50 = vld [vmem:[%s988_s2 + $0x70] sm:$0xff]  ;;  %v367_v51 = vld [vmem:[%s991_s3 + $0x68] sm:$0xff] }
  0x11   :  { %576 = vmatmul.mubr.msk.f32.gmra.mrb[2].mxu0 %vm48_vm0, %v31_v21  ;;  %588 = vmatmul.mubr.msk.f32.gmra.mrb[2].mxu1 %vm48_vm0, %v39_v22  ;;  %v257_v49 = vld [vmem:[%s988_s2 + $0x78] sm:$0xff]  ;;  %v366_v52 = vld [vmem:[%s991_s3 + $0x60] sm:$0xff]  ;;  %v368_v54 = vld [vmem:[%s991_s3 + $0x70] sm:$0xff] }
  0x12   :  { %578 = vmatprep.mubr.msk.f32.mxu0 %vm48_vm0, %v32_v23  ;;  %590 = vmatprep.mubr.msk.f32.mxu1 %vm48_vm0, %v40_v24  ;;  %v369_v53 = vld [vmem:[%s991_s3 + $0x78] sm:$0xff]  ;;  %v858_v21 = vld [vmem:[%s994_s4] ss:$0 sm:$0xff] }
  0x13   :  { %305 = vperm.xlu1 %612, %v251_v25   ;;  %300 = vperm.xlu0 %611, %v250_v26  }
  0x15   :  { %579 = vmatmul.mubr.msk.f32.gmra.mrb[4].mxu0 %vm48_vm0, %v33_v27  ;;  %591 = vmatmul.mubr.msk.f32.gmra.mrb[4].mxu1 %vm48_vm0, %v41_v28 }
  0x16   :  { %581 = vmatprep.mubr.msk.f32.mxu0 %vm48_vm0, %v34_v29  ;;  %593 = vmatprep.mubr.msk.f32.mxu1 %vm48_vm0, %v42_v30 }
  0x17   :  { %375 = vperm.xlu1 %612, %v355_v31   ;;  %372 = vperm.xlu0 %611, %v354_v32  }
  0x19   :  { %582 = vmatmul.mubr.msk.f32.gmra.mrb[6].mxu0 %vm48_vm0, %v35_v33  ;;  %594 = vmatmul.mubr.msk.f32.gmra.mrb[6].mxu1 %vm48_vm0, %v43_v34 }
  0x1b   :  { %381 = vperm.xlu1 %612, %v357_v35   ;;  %378 = vperm.xlu0 %611, %v356_v36  }
  0x1f   :  { %387 = vperm.xlu1 %612, %v359_v37   ;;  %384 = vperm.xlu0 %611, %v358_v38  }
  0x23   :  { %393 = vperm.xlu1 %612, %v361_v39   ;;  %390 = vperm.xlu0 %611, %v360_v40  }
  0x27   :  { %315 = vperm.xlu1 %612, %v253_v41   ;;  %310 = vperm.xlu0 %611, %v252_v42  }
  0x2b   :  { %399 = vperm.xlu1 %612, %v363_v43   ;;  %396 = vperm.xlu0 %611, %v362_v44  }
  0x2f   :  { %405 = vperm.xlu1 %612, %v365_v45   ;;  %402 = vperm.xlu0 %611, %v364_v46  }
  0x33   :  { %325 = vperm.xlu1 %612, %v255_v47   ;;  %320 = vperm.xlu0 %611, %v254_v48  }
  0x37   :  { %335 = vperm.xlu1 %612, %v257_v49   ;;  %330 = vperm.xlu0 %611, %v256_v50  }
  0x3b   :  { %411 = vperm.xlu1 %612, %v367_v51   ;;  %408 = vperm.xlu0 %611, %v366_v52  }
  0x3f   :  { %417 = vperm.xlu1 %612, %v369_v53   ;;  %414 = vperm.xlu0 %611, %v368_v54  }
  0x81   :  { %v829_v57 = vpop.permute.xlu1 %270  ;;  %v261_v58 = vpop.permute.xlu0 %260 }
  0x86   :  { %v276_v59 = vpop.permute.xlu1 %275  ;;  %v266_v60 = vpop.permute.xlu0 %265 }
  0x8a   :  { %v831_v61 = vpop.permute.xlu1 %285  ;;  %v833_v62 = vpop.permute.xlu0 %280 }
  0x8e   :  { %v835_v63 = vpop.permute.xlu1 %295  ;;  %v837_v0 = vpop.permute.xlu0 %290 }
  0x92   :  { %v306_v1 = vpop.permute.xlu1 %305  ;;  %v301_v2 = vpop.permute.xlu0 %300 }
  0x96   :  { %v376_v3 = vpop.permute.xlu1 %375  ;;  %v373_v4 = vpop.permute.xlu0 %372 }
  0x97   :  { %vm424_vm1 = vcmp.eq.s32.totalorder %v376_v3, %v858_v21  ;;  %vm423_vm2 = vcmp.eq.s32.totalorder %v373_v4, %v858_v21 }
  0x9a   :  { %v382_v5 = vpop.permute.xlu1 %381  ;;  %v839_v6 = vpop.permute.xlu0 %378 }
  0x9b   :  { %vm426_vm3 = vcmp.eq.s32.totalorder %v382_v5, %v858_v21  ;;  %vm425_vm4 = vcmp.eq.s32.totalorder %v839_v6, %v858_v21 }
  0x9e   :  { %v841_v7 = vpop.permute.xlu1 %387  ;;  %v843_v8 = vpop.permute.xlu0 %384 }
  0x9f   :  { %vm428_vm5 = vcmp.eq.s32.totalorder %v841_v7, %v858_v21  ;;  %vm427_vm6 = vcmp.eq.s32.totalorder %v843_v8, %v858_v21 }
  0xa2   :  { %v845_v9 = vpop.permute.xlu1 %393  ;;  %v847_v10 = vpop.permute.xlu0 %390 }
  0xa3   :  { %vm430_vm12 = vcmp.eq.s32.totalorder %v845_v9, %v858_v21  ;;  %vm429_vm13 = vcmp.eq.s32.totalorder %v847_v10, %v858_v21 }
  0xa6   :  { %v316_v11 = vpop.permute.xlu1 %315  ;;  %v311_v12 = vpop.permute.xlu0 %310 }
  0xaa   :  { %v400_v13 = vpop.permute.xlu1 %399  ;;  %v397_v14 = vpop.permute.xlu0 %396 }
  0xab   :  { %vm432_vm7 = vcmp.eq.s32.totalorder %v400_v13, %v858_v21  ;;  %vm431_vm8 = vcmp.eq.s32.totalorder %v397_v14, %v858_v21 }
  0xae   :  { %v406_v15 = vpop.permute.xlu1 %405  ;;  %v849_v16 = vpop.permute.xlu0 %402 }
  0xaf   :  { %vm434_vm9 = vcmp.eq.s32.totalorder %v406_v15, %v858_v21  ;;  %vm433_vm15 = vcmp.eq.s32.totalorder %v849_v16, %v858_v21 }
  0xb2   :  { %v326_v17 = vpop.permute.xlu1 %325  ;;  %v321_v18 = vpop.permute.xlu0 %320 }
  0xb6   :  { %v851_v19 = vpop.permute.xlu1 %335  ;;  %v853_v20 = vpop.permute.xlu0 %330 }
  0xba   :  { %v860_v22 = vpop.permute.xlu1 %411  ;;  %v867_v28 = vpop.permute.xlu0 %408 }
  0xbb   :  { %vm436_vm10 = vcmp.eq.s32.totalorder %v860_v22, %v858_v21  ;;  %vm435_vm11 = vcmp.eq.s32.totalorder %v867_v28, %v858_v21 }
  0xbe   :  { %v886_v40 = vpop.permute.xlu1 %417  ;;  %v415_v9 = vpop.permute.xlu0 %414 }
  0xbf   :  { %vm438_vm14 = vcmp.eq.s32.totalorder %v886_v40, %v858_v21  ;;  %vm437_vm0 = vcmp.eq.s32.totalorder %v415_v9, %v858_v21 }
  0xe0   :  { %v574_v23 = vpop.f32.mrb[0].mxu0  ;;  %v586_v24 = vpop.f32.mrb[0].mxu1 }
  0xe1   :  { %v163_v25 = vpop.f32.mrb[1].mxu0  ;;  %v203_v26 = vpop.f32.mrb[1].mxu1  ;;  %v339_v27 = vsub.f32 %v266_v60, %v574_v23  ;;  %v347_v29 = vsub.f32 %v306_v1, %v586_v24 }
  0xe2   :  { %v338_v30 = vsub.f32 %v261_v58, %v163_v25  ;;  %v346_v31 = vsub.f32 %v301_v2, %v203_v26 }
  0xe3   :  { %v440_v37 = vsel %vm424_vm1, %v339_v27, -inf  ;;  %v477_v38 = vsel %vm424_vm1, inf, %v339_v27  ;;  %v448_v41 = vsel %vm432_vm7, %v347_v29, -inf  ;;  %v485_v42 = vsel %vm432_vm7, inf, %v347_v29 }
  0xe4   :  { %v577_v32 = vpop.f32.mrb[2].mxu0  ;;  %v589_v33 = vpop.f32.mrb[2].mxu1  ;;  %v439_v43 = vsel %vm423_vm2, %v338_v30, -inf  ;;  %v476_v45 = vsel %vm423_vm2, inf, %v338_v30  ;;  %v447_v46 = vsel %vm431_vm8, %v346_v31, -inf  ;;  %v484_v47 = vsel %vm431_vm8, inf, %v346_v31 }
  0xe5   :  { %v341_v34 = vsub.f32 %v276_v59, %v577_v32  ;;  %v173_v35 = vpop.f32.mrb[3].mxu0  ;;  %v213_v36 = vpop.f32.mrb[3].mxu1  ;;  %v349_v39 = vsub.f32 %v316_v11, %v589_v33 }
  0xe6   :  { %v340_v44 = vsub.f32 %v829_v57, %v173_v35  ;;  %v348_v48 = vsub.f32 %v311_v12, %v213_v36 }
  0xe7   :  { %v442_v51 = vsel %vm426_vm3, %v341_v34, -inf  ;;  %v479_v52 = vsel %vm426_vm3, inf, %v341_v34  ;;  %v450_v57 = vsel %vm434_vm9, %v349_v39, -inf  ;;  %v487_v58 = vsel %vm434_vm9, inf, %v349_v39 }
  0xe8   :  { %v580_v49 = vpop.f32.mrb[4].mxu0  ;;  %v592_v50 = vpop.f32.mrb[4].mxu1  ;;  %v441_v1 = vsel %vm425_vm4, %v340_v44, -inf  ;;  %v449_v10 = vsel %vm433_vm15, %v348_v48, -inf }
  0xe9   :  { %v343_v53 = vsub.f32 %v831_v61, %v580_v49  ;;  %v351_v54 = vsub.f32 %v326_v17, %v592_v50  ;;  %v183_v55 = vpop.f32.mrb[5].mxu0  ;;  %v223_v56 = vpop.f32.mrb[5].mxu1 }
  0xea   :  { %v342_v59 = vsub.f32 %v833_v62, %v183_v55  ;;  %v350_v60 = vsub.f32 %v321_v18, %v223_v56 }
  0xeb   :  { %v444_v61 = vsel %vm428_vm5, %v343_v53, -inf  ;;  %v481_v2 = vsel %vm428_vm5, inf, %v343_v53  ;;  %v452_v62 = vsel %vm436_vm10, %v351_v54, -inf  ;;  %v489_v13 = vsel %vm436_vm10, inf, %v351_v54 }
  0xec   :  { %v456_v3 = vmax.f32 %v440_v37, %v444_v61  ;;  %v493_v4 = vmin.f32 %v477_v38, %v481_v2  ;;  %v443_v5 = vsel %vm427_vm6, %v342_v59, -inf  ;;  %v480_v11 = vsel %vm427_vm6, inf, %v342_v59  ;;  %v583_v12 = vpop.f32.mrb[6].mxu0  ;;  %v595_v7 = vpop.f32.mrb[6].mxu1 }
  0xed   :  { %v455_v14 = vmax.f32 %v439_v43, %v443_v5  ;;  %v492_v15 = vmin.f32 %v476_v45, %v480_v11  ;;  %v451_v17 = vsel %vm435_vm11, %v350_v60, -inf  ;;  %v193_v18 = vpop.f32.mrb[7].mxu0  ;;  %v233_v23 = vpop.f32.mrb[7].mxu1  ;;  %v488_v8 = vsel %vm435_vm11, inf, %v350_v60  ;;  %v516_v5 = vld [vmem:[%s993_s6] sm:$0x1] }
  0xee   :  { %v460_v24 = vmax.f32 %v456_v3, %v448_v41  ;;  %v497_v25 = vmin.f32 %v493_v4, %v485_v42  ;;  %v345_v26 = vsub.f32 %v835_v63, %v583_v12  ;;  %v353_v22 = vsub.f32 %v851_v19, %v595_v7  ;;  %v513_v4 = vld [vmem:[%s992_s5] sm:$0x1] }
  0xef   :  { %v459_v27 = vmax.f32 %v455_v14, %v447_v46  ;;  %v496_v29 = vmin.f32 %v492_v15, %v484_v47  ;;  %v344_v30 = vsub.f32 %v837_v0, %v193_v18  ;;  %v478_v19 = vsel %vm425_vm4, inf, %v340_v44 }
  0xf0   :  { %v464_v31 = vmax.f32 %v460_v24, %v452_v62  ;;  %v501_v32 = vmin.f32 %v497_v25, %v489_v13  ;;  %v446_v33 = vsel %vm430_vm12, %v345_v26, -inf  ;;  %v483_v34 = vsel %vm430_vm12, inf, %v345_v26 }
  0xf1   :  { %v463_v28 = vmax.f32 %v459_v27, %v451_v17  ;;  %v500_v35 = vmin.f32 %v496_v29, %v488_v8  ;;  %v458_v36 = vmax.f32 %v442_v51, %v446_v33  ;;  %v495_v63 = vmin.f32 %v479_v52, %v483_v34 }
  0xf2   :  { %v445_v0 = vsel %vm429_vm13, %v344_v30, -inf  ;;  %v482_v37 = vsel %vm429_vm13, inf, %v344_v30  ;;  %v352_v38 = vsub.f32 %v853_v20, %v233_v23  ;;  %v454_v6 = vsel %vm438_vm14, %v353_v22, -inf }
  0xf3   :  { %v467_v39 = vmax.f32 %v463_v28, %v464_v31  ;;  %v504_v41 = vmin.f32 %v500_v35, %v501_v32  ;;  %v462_v42 = vmax.f32 %v458_v36, %v450_v57  ;;  %v499_v43 = vmin.f32 %v495_v63, %v487_v58 }
  0xf4   :  { %v491_v44 = vsel %vm438_vm14, inf, %v353_v22  ;;  %v457_v45 = vmax.f32 %v441_v1, %v445_v0  ;;  %v494_v46 = vmin.f32 %v478_v19, %v482_v37  ;;  %v486_v20 = vsel %vm433_vm15, inf, %v348_v48 }
  0xf5   :  { %v466_v47 = vmax.f32 %v462_v42, %v454_v6  ;;  %v503_v49 = vmin.f32 %v499_v43, %v491_v44  ;;  %v453_v52 = vsel %vm437_vm0, %v352_v38, -inf  ;;  %v490_v53 = vsel %vm437_vm0, inf, %v352_v38 }
  0xf6   :  { %v461_v50 = vmax.f32 %v457_v45, %v449_v10  ;;  %v498_v51 = vmin.f32 %v494_v46, %v486_v20 }
  0xf8   :  { %v465_v40 = vmax.f32 %v461_v50, %v453_v52  ;;  %v502_v54 = vmin.f32 %v498_v51, %v490_v53 }
  0xfa   :  { %v468_v55 = vmax.f32 %v465_v40, %v466_v47  ;;  %v505_v56 = vmin.f32 %v502_v54, %v503_v49 }
  0xfc   :  { %v469_v57 = vmax.f32 %v467_v39, %v468_v55  ;;  %v506_v58 = vmin.f32 %v504_v41, %v505_v56 }
  0xfe   :  { %v470_v59 = vrot.slane %v469_v57, 4  ;;  %v507_v60 = vrot.slane %v506_v58, 4 }
 0x100   :  { %v471_v1 = vmax.f32 %v469_v57, %v470_v59  ;;  %v508_v61 = vmin.f32 %v506_v58, %v507_v60 }
 0x102   :  { %v472_v16 = vrot.slane %v471_v1, 2  ;;  %v509_v48 = vrot.slane %v508_v61, 2 }
 0x104   :  { %v473_v2 = vmax.f32 %v471_v1, %v472_v16  ;;  %v510_v62 = vmin.f32 %v508_v61, %v509_v48 }
 0x106   :  { %v474_v3 = vrot.slane %v473_v2, 1  ;;  %v511_v21 = vrot.slane %v510_v62, 1 }
 0x108   :  { %v475_v11 = vmax.f32 %v473_v2, %v474_v3  ;;  %v512_v12 = vmin.f32 %v510_v62, %v511_v21 }
 0x10a   :  { %v514_v7 = vmax.f32 %v513_v4, %v475_v11  ;;  %v517_v13 = vmin.f32 %v516_v5, %v512_v12 }
 0x10c   :  { %515 = vst [vmem:[%s992_s5] sm:$0x1] %v514_v7  ;;  %518 = vst [vmem:[%s993_s6] sm:$0x1] %v517_v13 }

</bundles_post_ra>
